<compile_context>
chip_gen: v6e
topology: v6e:2x2x1
jax: 0.10.0
libtpu: 0.0.40
codegen_flags: <defaults>
</compile_context>

<pallas_src>
import jax
import jax.numpy as jnp
from jax.experimental import pallas as pl
from jax.experimental.pallas import tpu as pltpu

# ---- synthetic-model dimensions (SEQ_CLS task) -------------------------------
B = 2          # batch
S = 8          # sequence length
H = 32         # token_dim / hidden size
R = 8          # LoRA rank r
L = 4          # num_labels
LORA_ALPHA = 16.0
LORA_SCALING = LORA_ALPHA / R

# Padded kernel shapes (lane-dense, (8,128)-friendly).
KP = 128       # padded contraction dim (holds H weight rows + 1 bias row)
LP = 128       # padded label / lane dim


def peft_seq_cls_kernel(x_pack_ref, w_pack_ref, logits_ref):
    """Single fused matmul: logits_padded = x_pack @ w_pack.

    x_pack_ref : (B, KP)   [cls_x | 1 | 0-pad]   — ones column carries the bias
    w_pack_ref : (KP, LP)  [[W_total], [bc], [0-pad]]  zero-padded to 128 lanes
    logits_ref : (B, LP)   lane-dense output; wrapper slices [:, :L]
    """
    logits_ref[...] = jnp.dot(
        x_pack_ref[...], w_pack_ref[...],
        preferred_element_type=jnp.float32,
    ).astype(logits_ref.dtype)


def peft_seq_cls_forward(x, w, a, b, wc, bc):
    """Wrapper.

    Frozen/adapter-weight algebra (classifier folding, LoRA scaling, bias
    packing, zero padding) is done once here with plain XLA ops; the Pallas
    kernel runs exactly one (B,KP)@(KP,LP) MXU matmul with a lane-dense store.
    Single grid point, full-array VMEM blocks (working set is a few KB).
    At inference with a frozen W the W@Wc fold should be hoisted/memoized
    outside this per-call wrapper; it is recomputed here because A/B/Wc are
    trainable during PEFT fine-tuning.
    """
    # CLS-token pooling before any matmul: S× less work and DMA traffic.
    cls_x = x[:, 0, :]                                            # (B, H)

    # Fold the whole LoRA + classifier path into one effective (H, L) weight.
    b_head = jnp.dot(b, wc)                                       # (R, L)
    w_total = jnp.dot(w, wc) + jnp.float32(LORA_SCALING) * jnp.dot(a, b_head)

    # Pack [W_total ; bc] into one zero-padded (KP, LP) slab (2 DMAs total).
    w_pack = jnp.zeros((KP, LP), jnp.float32)
    w_pack = w_pack.at[:H, :L].set(w_total)
    w_pack = w_pack.at[H, :L].set(bc[0])

    # Augment cls_x with a ones column (bias) and zero-pad to KP lanes.
    x_pack = jnp.zeros((B, KP), jnp.float32)
    x_pack = x_pack.at[:, :H].set(cls_x)
    x_pack = x_pack.at[:, H].set(1.0)

    flops = 2 * B * KP * LP
    bytes_accessed = 4 * (B * KP + KP * LP + B * LP)

    logits_padded = pl.pallas_call(
        peft_seq_cls_kernel,
        out_shape=jax.ShapeDtypeStruct((B, LP), jnp.float32),
        in_specs=[
            pl.BlockSpec(memory_space=pltpu.MemorySpace.VMEM),    # x_pack
            pl.BlockSpec(memory_space=pltpu.MemorySpace.VMEM),    # w_pack
        ],
        out_specs=pl.BlockSpec(memory_space=pltpu.MemorySpace.VMEM),
        cost_estimate=pl.CostEstimate(
            flops=flops, transcendentals=0, bytes_accessed=bytes_accessed),
    )(x_pack, w_pack)

    return logits_padded[:, :L]                                   # (B, L)


def _reference(x, w, a, b, wc, bc):
    """Un-folded original formulation (full-sequence LoRA dense, then pool)."""
    base = jnp.einsum('bsh,hd->bsd', x, w)
    lora = jnp.einsum('bsr,rd->bsd', jnp.einsum('bsh,hr->bsr', x, a), b)
    hidden = base + LORA_SCALING * lora
    pooled = hidden[:, 0, :]
    return pooled @ wc + bc


if __name__ == "__main__":
    key = jax.random.PRNGKey(0)
    kx, kw, ka, kwc, kbc = jax.random.split(key, 5)

    # deterministic parameter init (shapes implied by the module's config):
    #   frozen base dense (H,H), LoRA A (H,R) ~ N(0, 1/H), LoRA B nonzero so
    #   the LoRA path is exercised, classifier (H,L) + bias (1,L).
    x  = jax.random.normal(kx,  (B, S, H), dtype=jnp.float32)
    w  = jax.random.normal(kw,  (H, H),    dtype=jnp.float32) * 0.05
    a  = jax.random.normal(ka,  (H, R),    dtype=jnp.float32) * (1.0 / H)
    b  = jnp.full((R, H), 0.01, dtype=jnp.float32)
    wc = jax.random.normal(kwc, (H, L),    dtype=jnp.float32) * 0.05
    bc = jax.random.normal(kbc, (1, L),    dtype=jnp.float32) * 0.01

    logits = peft_seq_cls_forward(x, w, a, b, wc, bc)
    jax.block_until_ready(logits)

    ref = _reference(x, w, a, b, wc, bc)
    assert logits.shape == (B, L)
    assert jnp.allclose(logits, ref, atol=1e-4, rtol=1e-4), "mismatch vs reference"

    print("KERNEL_OK")
</pallas_src>

<mosaic_0001>
module attributes {stable_mosaic.version = 11 : i64} {
  func.func @peft_seq_cls_kernel(%arg0: memref<2x128xf32, #tpu.memory_space<vmem>>, %arg1: memref<128x128xf32, #tpu.memory_space<vmem>>, %arg2: memref<2x128xf32, #tpu.memory_space<vmem>>) attributes {dimension_semantics = [], scalar_prefetch = 0 : i64, scratch_operands = 0 : i64, tpu.core_type = #tpu.core_type<tc>} {
    %c0 = arith.constant 0 : index
    %c0_0 = arith.constant 0 : index
    %0 = vector.load %arg0[%c0, %c0_0] : memref<2x128xf32, #tpu.memory_space<vmem>>, vector<2x128xf32>
    %c0_1 = arith.constant 0 : index
    %c0_2 = arith.constant 0 : index
    %1 = vector.load %arg1[%c0_1, %c0_2] : memref<128x128xf32, #tpu.memory_space<vmem>>, vector<128x128xf32>
    %cst = arith.constant dense<0.000000e+00> : vector<2x128xf32>
    %2 = tpu.matmul %0, %1, %cst {dimension_numbers = #tpu.dot_dimension_numbers<[1], [0], [0], [1], [0, 0, 1, 1], [], []>} : vector<2x128xf32>, vector<128x128xf32>, vector<2x128xf32> -> vector<2x128xf32>
    %c0_3 = arith.constant 0 : index
    %c0_4 = arith.constant 0 : index
    %3 = vector.load %arg2[%c0_3, %c0_4] : memref<2x128xf32, #tpu.memory_space<vmem>>, vector<2x128xf32>
    tpu.vector_store %arg2[%c0_3, %c0_4], %2 {strides = array<i32>} : memref<2x128xf32, #tpu.memory_space<vmem>>, vector<2x128xf32>,
    return
  }
}

</mosaic_0001>

<bundles_post_ra>
// kernel: tpu_custom_call.1
= control target key start
LH: loop header
LB: loop body
LE: loop exit
PB: predicated region body
PF: predicated region fallthrough
CT: control target
= control target key end

     0   :  { %7 = vsyncpa [#allocation3], 0  ;;  %s298_s0 = inlined_call_operand.hbm [shape: f32[2,128], index: 0, kind: input, shape index: {}]   ;;  %s299_s1 = inlined_call_operand.hbm [shape: f32[128,128], index: 1, kind: input, shape index: {}]   ;;  %s300_s2 = inlined_call_operand.hbm [shape: f32[2,128], index: 2, kind: output, shape index: {}]  }
   0x1   :  { %8 = vsyncpa [#allocation6], 0 }
   0x2   :  { %9 = vsyncpa [#allocation4], 0  ;;  %s267_s9 = smov [#allocation2]   ;;  %s268_s11 = smov [#allocation5]  }
   0x3   :  { %s16_s10 = sshll.u32 %s267_s9, 4  ;;  %s25_s12 = sshll.u32 %s268_s11, 4  ;;  %s17_s10 = int_to_ptr.vmem [resolvable:$true] %s16_s10  ;;  %s26_s12 = int_to_ptr.vmem [resolvable:$true] %s25_s12 }
   0x4   :  { %s209_s13 = scalar_lea.vmem %s17_s10, 32  ;;  %p214_p1 = scmp.lt.s32.totalorder %s17_s10, %s17_s10 }
   0x5   :  { %p210_p0 = scmp.ne.s32.totalorder %s17_s10, %s209_s13  ;;  %p215_p2 = scmp.lt.s32.totalorder %s209_s13, %s209_s13 }
   0x7   :  { %p216_p3 = por %p215_p2, %p214_p1 }
   0x9   :  { %p217_p4 = pnand %p216_p3, %p210_p0 }
   0xb   :  { %220 = shalt.err (!%p217_p4)
}
   0xc   :  { %19 = dma.hbm_to_vmem [thread:$0]  %s298_s0, 32, %s17_s10, [#allocation3]  }
   0xd   :  { %s229_s16 = scalar_lea.vmem %s26_s12, 2048  ;;  %p234_p6 = scmp.lt.s32.totalorder %s26_s12, %s26_s12 }
   0xe   :  { %p230_p5 = scmp.ne.s32.totalorder %s26_s12, %s229_s16  ;;  %p235_p7 = scmp.lt.s32.totalorder %s229_s16, %s229_s16 }
  0x10   :  { %p236_p8 = por %p235_p7, %p234_p6 }
  0x12   :  { %p237_p9 = pnand %p236_p8, %p230_p5 }
  0x14   :  { %240 = shalt.err (!%p237_p9)
}
  0x15   :  { %s269_s17 = smov 128   ;;  %s270_s18 = smov 8  }
  0x16   :  { %31 = dma.hbm_to_vmem [thread:$0]  %s299_s1, 2048, %s26_s12, [#allocation6], %s269_s17, %s269_s17, %s270_s18  }
  0x17   :  { %261 = dma.done.wait [#allocation3], 32  }
  0x18   :  { %262 = vsyncadd [#allocation3], 4294967264 }
  0x19   :  { %263 = dma.done.wait [#allocation6], 2048  }
  0x1a   :  { %264 = vsyncadd [#allocation6], 4294965248  ;;  %v271_v0 = vmov 0.0   ;;  %vm272_vm0 = vmmov 0   ;;  %v54_v1 = vld [vmem:[#allocation5 + $0x78] sm:$0xff]  ;;  %v53_v2 = vld [vmem:[#allocation5 + $0x70] sm:$0xff] }
  0x1b   :  { %159 = vmatprep.subr.mxu0 %v271_v0  ;;  %191 = vmatprep.mubr.msk.f32.mxu0 %vm272_vm0, %v271_v0  ;;  %v52_v3 = vld [vmem:[#allocation5 + $0x68] sm:$0xff]  ;;  %v51_v4 = vld [vmem:[#allocation5 + $0x60] sm:$0xff]  ;;  %v50_v5 = vld [vmem:[#allocation5 + $0x58] sm:$0xff]  ;;  %s273_s0 = smov [#allocation7]  }
  0x1c   :  { %160 = vmatpush3.msra.mxu0 %v54_v1  ;;  %v49_v6 = vld [vmem:[#allocation5 + $0x50] sm:$0xff]  ;;  %v48_v7 = vld [vmem:[#allocation5 + $0x48] sm:$0xff]  ;;  %v47_v8 = vld [vmem:[#allocation5 + $0x40] sm:$0xff]  ;;  %s132_s1 = sshll.u32 %s273_s0, 4  ;;  %s133_s1 = int_to_ptr.vmem [resolvable:$true] %s132_s1 }
  0x1d   :  { %161 = vmatprep.subr.mxu0 %v271_v0  ;;  %v46_v9 = vld [vmem:[#allocation5 + $0x38] sm:$0xff]  ;;  %v45_v10 = vld [vmem:[#allocation5 + $0x30] sm:$0xff]  ;;  %v44_v11 = vld [vmem:[#allocation5 + $0x28] sm:$0xff]  ;;  %s241_s21 = scalar_lea.vmem %s133_s1, 32  ;;  %p246_p11 = scmp.lt.s32.totalorder %s133_s1, %s133_s1 }
  0x1e   :  { %162 = vmatpush3.msra.mxu0 %v53_v2  ;;  %v43_v12 = vld [vmem:[#allocation5 + $0x20] sm:$0xff]  ;;  %v42_v13 = vld [vmem:[#allocation5 + $0x18] sm:$0xff]  ;;  %v41_v14 = vld [vmem:[#allocation5 + $0x10] sm:$0xff]  ;;  %p242_p10 = scmp.ne.s32.totalorder %s133_s1, %s241_s21  ;;  %p247_p12 = scmp.lt.s32.totalorder %s241_s21, %s241_s21 }
  0x1f   :  { %163 = vmatprep.subr.mxu0 %v271_v0  ;;  %v40_v15 = vld [vmem:[#allocation5 + $0x8] sm:$0xff]  ;;  %v39_v16 = vld [vmem:[#allocation5] sm:$0xff]  ;;  %v38_v17 = vld [vmem:[#allocation2] sm:$0x3] }
  0x20   :  { %164 = vmatpush3.msra.mxu0 %v52_v3  ;;  %p248_p13 = por %p247_p12, %p246_p11 }
  0x21   :  { %165 = vmatprep.subr.mxu0 %v271_v0 }
  0x22   :  { %166 = vmatpush3.msra.mxu0 %v51_v4  ;;  %p249_p0 = pnand %p248_p13, %p242_p10 }
  0x23   :  { %167 = vmatprep.subr.mxu0 %v271_v0 }
  0x24   :  { %168 = vmatpush3.msra.mxu0 %v50_v5 }
  0x25   :  { %169 = vmatprep.subr.mxu0 %v271_v0 }
  0x26   :  { %170 = vmatpush3.msra.mxu0 %v49_v6 }
  0x27   :  { %171 = vmatprep.subr.mxu0 %v271_v0 }
  0x28   :  { %172 = vmatpush3.msra.mxu0 %v48_v7 }
  0x29   :  { %173 = vmatprep.subr.mxu0 %v271_v0 }
  0x2a   :  { %174 = vmatpush3.msra.mxu0 %v47_v8 }
  0x2b   :  { %175 = vmatprep.subr.mxu0 %v271_v0 }
  0x2c   :  { %176 = vmatpush3.msra.mxu0 %v46_v9 }
  0x2d   :  { %177 = vmatprep.subr.mxu0 %v271_v0 }
  0x2e   :  { %178 = vmatpush3.msra.mxu0 %v45_v10 }
  0x2f   :  { %179 = vmatprep.subr.mxu0 %v271_v0 }
  0x30   :  { %180 = vmatpush3.msra.mxu0 %v44_v11 }
  0x31   :  { %181 = vmatprep.subr.mxu0 %v271_v0 }
  0x32   :  { %182 = vmatpush3.msra.mxu0 %v43_v12 }
  0x33   :  { %183 = vmatprep.subr.mxu0 %v271_v0 }
  0x34   :  { %184 = vmatpush3.msra.mxu0 %v42_v13 }
  0x35   :  { %185 = vmatprep.subr.mxu0 %v271_v0 }
  0x36   :  { %186 = vmatpush3.msra.mxu0 %v41_v14 }
  0x37   :  { %187 = vmatprep.subr.mxu0 %v271_v0 }
  0x38   :  { %188 = vmatpush3.msra.mxu0 %v40_v15 }
  0x39   :  { %189 = vmatprep.subr.mxu0 %v271_v0 }
  0x3a   :  { %190 = vmatpush3.msra.mxu0 %v39_v16 }
  0x3b   :  { %192 = vmatmul.mubr.f32.vlgmr.msra.gmra.mxu0 %v38_v17 }
  0xfb   :  { %v121_v18 = vpop.f32.mrf.mxu0 }
  0xfc   :  { %125 = vst [vmem:[#allocation7] sm:$0x3] %v121_v18 }
  0xfd   :  { %v193_v19 = vpop.f32.mrf.mxu0 }
  0xfe   :  { %252 = shalt.err (!%p249_p0)
}
  0xff   :  { %135 = dma.vmem_to_hbm [thread:$0]  %s133_s1, 32, %s300_s2, [#allocation4]  }
 0x100   :  { %265 = dma.done.wait [#allocation4], 32  }
 0x101   :  { %266 = vsyncadd [#allocation4], 4294967264 }
 0x102   :  { %139 = vsyncpa [#allocation3], 1 }
 0x103   :  { %140 = vsyncpa [#allocation6], 1 }
 0x104   :  { %141 = vsyncpa [#allocation4], 1 }

</bundles_post_ra>
